<compile_context>
chip_gen: v6e
topology: v6e:2x2x1
jax: 0.10.0
libtpu: 0.0.40
codegen_flags: <defaults>
</compile_context>

<pallas_src>
import functools

import jax
import jax.numpy as jnp
from jax.experimental import pallas as pl
from jax.experimental.pallas import tpu as pltpu

BN_EPS = 1e-5
LRELU_SLOPE = 0.2          # LeakyReLU(0.2, inplace=True) in the PyTorch module
LANE = 128


def _round_up(x, m):
    return (x + m - 1) // m * m


# ------------------------------------------------------------------ kernels -

def conv1_lrelu_conv2_stats_kernel(x_ref, w1_ref, b1_ref, w2_ref,
                                   y2_ref, sum_ref, sq_ref, *, m_valid, tm):
    """Fused: y2 = lrelu(x @ W1 + b1) @ W2, plus BN sum / sum-of-squares."""
    i = pl.program_id(0)

    @pl.when(i == 0)
    def _():
        sum_ref[...] = jnp.zeros_like(sum_ref)
        sq_ref[...] = jnp.zeros_like(sq_ref)

    x = x_ref[...]                                               # (TM, Cin) bf16
    y1 = jnp.dot(x, w1_ref[...], preferred_element_type=jnp.float32)
    y1 = y1 + b1_ref[...]                                        # f32 bias
    y1 = jnp.where(y1 >= 0, y1, LRELU_SLOPE * y1)
    y2 = jnp.dot(y1.astype(jnp.bfloat16), w2_ref[...],
                 preferred_element_type=jnp.float32)             # (TM, C2) f32
    y2_ref[...] = y2

    # Mask row-padding out of the BatchNorm statistics.
    row = jax.lax.broadcasted_iota(jnp.int32, (tm, 1), 0) + i * tm
    valid = (row < m_valid).astype(jnp.float32)                  # (TM, 1)
    y2m = y2 * valid
    sum_ref[...] += jnp.sum(y2m, axis=0, keepdims=True)
    sq_ref[...] += jnp.sum(y2m * y2, axis=0, keepdims=True)


def bn_lrelu_conv3_kernel(y2_ref, sum_ref, sq_ref, gamma_ref, beta_ref, w3_ref,
                          o_ref, *, inv_count):
    """Fused: BatchNorm (batch stats) -> LeakyReLU -> 1x1 conv (Cout padded to 128)."""
    mean = sum_ref[...] * inv_count                              # (1, C2) f32
    var = jnp.maximum(sq_ref[...] * inv_count - mean * mean, 0.0)
    inv_std = jax.lax.rsqrt(var + BN_EPS)
    scale = gamma_ref[...] * inv_std
    shift = beta_ref[...] - mean * scale
    y = y2_ref[...] * scale + shift
    y = jnp.where(y >= 0, y, LRELU_SLOPE * y)
    o_ref[...] = jnp.dot(y.astype(jnp.bfloat16), w3_ref[...],
                         preferred_element_type=jnp.float32)


# ------------------------------------------------------------------ wrapper -

def pixel_discriminator_forward(params, x_nchw, *, tile_m=256):
    """x_nchw: (N, Cin, H, W) f32 -> (N, 1, H, W) f32 (PyTorch layout)."""
    N, Cin, H, W = x_nchw.shape
    ndf = params["w1"].shape[1]
    c2 = params["w2"].shape[1]
    cout = params["w3"].shape[1]
    M = N * H * W

    # Fold batch + spatial into the matmul M dimension (NHWC then flatten).
    xm = jnp.transpose(x_nchw, (0, 2, 3, 1)).reshape(M, Cin)

    # Row tile (multiple of 16 for bf16 sublanes); pad rows + input channels.
    tm = min(tile_m, _round_up(M, 16))
    m_pad = _round_up(M, tm)
    cin_pad = _round_up(Cin, 8)
    grid = m_pad // tm

    xm = jnp.pad(xm, ((0, m_pad - M), (0, cin_pad - Cin))).astype(jnp.bfloat16)
    w1 = jnp.pad(params["w1"], ((0, cin_pad - Cin), (0, 0))).astype(jnp.bfloat16)
    b1 = params["b1"].reshape(1, ndf).astype(jnp.float32)
    w2 = params["w2"].astype(jnp.bfloat16)

    y2, ssum, ssq = pl.pallas_call(
        functools.partial(conv1_lrelu_conv2_stats_kernel, m_valid=M, tm=tm),
        out_shape=(jax.ShapeDtypeStruct((m_pad, c2), jnp.float32),
                   jax.ShapeDtypeStruct((1, c2), jnp.float32),
                   jax.ShapeDtypeStruct((1, c2), jnp.float32)),
        grid=(grid,),
        in_specs=[pl.BlockSpec((tm, cin_pad), lambda i: (i, 0)),
                  pl.BlockSpec((cin_pad, ndf), lambda i: (0, 0)),
                  pl.BlockSpec((1, ndf), lambda i: (0, 0)),
                  pl.BlockSpec((ndf, c2), lambda i: (0, 0))],
        out_specs=(pl.BlockSpec((tm, c2), lambda i: (i, 0)),
                   pl.BlockSpec((1, c2), lambda i: (0, 0)),
                   pl.BlockSpec((1, c2), lambda i: (0, 0))),
        compiler_params=pltpu.CompilerParams(
            dimension_semantics=("arbitrary",)),   # stats output is revisited
    )(xm, w1, b1, w2)

    # Final 1x1 conv: pad the single output channel up to 128 lanes so the
    # stores are unmasked / lane-dense; slice the real channel afterwards.
    cout_pad = _round_up(cout, LANE)
    w3p = jnp.pad(params["w3"], ((0, 0), (0, cout_pad - cout))).astype(jnp.bfloat16)
    gamma = params["bn_w"].reshape(1, c2).astype(jnp.float32)
    beta = params["bn_b"].reshape(1, c2).astype(jnp.float32)

    out = pl.pallas_call(
        functools.partial(bn_lrelu_conv3_kernel, inv_count=1.0 / M),
        out_shape=jax.ShapeDtypeStruct((m_pad, cout_pad), jnp.float32),
        grid=(grid,),
        in_specs=[pl.BlockSpec((tm, c2), lambda i: (i, 0)),
                  pl.BlockSpec((1, c2), lambda i: (0, 0)),
                  pl.BlockSpec((1, c2), lambda i: (0, 0)),
                  pl.BlockSpec((1, c2), lambda i: (0, 0)),
                  pl.BlockSpec((1, c2), lambda i: (0, 0)),
                  pl.BlockSpec((c2, cout_pad), lambda i: (0, 0))],
        out_specs=pl.BlockSpec((tm, cout_pad), lambda i: (i, 0)),
        compiler_params=pltpu.CompilerParams(
            dimension_semantics=("parallel",)),
    )(y2, ssum, ssq, gamma, beta, w3p)

    out = out[:M, :cout].reshape(N, H, W, cout)
    return jnp.transpose(out, (0, 3, 1, 2))        # back to NCHW


# ------------------------------------------------------- pure-JAX reference -

def _ref_forward(params, x_nchw):
    """Same math (bf16 MXU inputs, f32 accumulation, train-mode BatchNorm)."""
    x = jnp.transpose(x_nchw, (0, 2, 3, 1)).astype(jnp.bfloat16)   # NHWC
    w1 = params["w1"].astype(jnp.bfloat16)
    w2 = params["w2"].astype(jnp.bfloat16)
    w3 = params["w3"].astype(jnp.bfloat16)

    y1 = jnp.einsum("nhwc,cd->nhwd", x, w1,
                    preferred_element_type=jnp.float32) + params["b1"]
    y1 = jnp.where(y1 >= 0, y1, LRELU_SLOPE * y1)
    y2 = jnp.einsum("nhwc,cd->nhwd", y1.astype(jnp.bfloat16), w2,
                    preferred_element_type=jnp.float32)
    mean = jnp.mean(y2, axis=(0, 1, 2))
    var = jnp.mean((y2 - mean) ** 2, axis=(0, 1, 2))
    y = (y2 - mean) * jax.lax.rsqrt(var + BN_EPS) * params["bn_w"] + params["bn_b"]
    y = jnp.where(y >= 0, y, LRELU_SLOPE * y)
    out = jnp.einsum("nhwc,cd->nhwd", y.astype(jnp.bfloat16), w3,
                     preferred_element_type=jnp.float32)
    return jnp.transpose(out, (0, 3, 1, 2))


# --------------------------------------------------------------------- main -

def make_params(key, input_nc, ndf):
    k1, k2, k3, k4, k5, k6 = jax.random.split(key, 6)
    c2 = 2 * ndf
    return {
        # 1x1 conv weights stored as (Cin, Cout) matmul matrices (PyTorch
        # OIHW (O,I,1,1) transposed / squeezed).
        "w1": 0.1 * jax.random.normal(k1, (input_nc, ndf), jnp.float32),
        "b1": 0.1 * jax.random.normal(k2, (ndf,), jnp.float32),
        "w2": 0.1 * jax.random.normal(k3, (ndf, c2), jnp.float32),     # bias=False
        "bn_w": 1.0 + 0.1 * jax.random.normal(k4, (c2,), jnp.float32),
        "bn_b": 0.1 * jax.random.normal(k5, (c2,), jnp.float32),
        "w3": 0.1 * jax.random.normal(k6, (c2, 1), jnp.float32),       # bias=False
    }


if __name__ == "__main__":
    N, Cin, H, W = 2, 3, 16, 16
    ndf = 64

    key = jax.random.PRNGKey(0)
    kp, kx = jax.random.split(key)
    params = make_params(kp, Cin, ndf)
    x = jax.random.normal(kx, (N, Cin, H, W), jnp.float32)

    out = jax.block_until_ready(pixel_discriminator_forward(params, x))
    ref = jax.block_until_ready(_ref_forward(params, x))

    assert out.shape == (N, 1, H, W), out.shape
    # Both sides run bf16 MXU inputs with f32 accumulation; tolerance covers
    # bf16 quantization-boundary / summation-order effects (typical max diff
    # is ~1e-4 level).
    err = float(jnp.max(jnp.abs(out - ref)))
    assert jnp.allclose(out, ref, rtol=2e-2, atol=2e-2), err
    print("KERNEL_OK")
</pallas_src>

<mosaic_0001>
module attributes {stable_mosaic.version = 11 : i64} {
  func.func @conv1_lrelu_conv2_stats_kernel(%arg0: i32, %arg1: memref<256x8xbf16, #tpu.memory_space<vmem>>, %arg2: memref<8x64xbf16, #tpu.memory_space<vmem>>, %arg3: memref<1x64xf32, #tpu.memory_space<vmem>>, %arg4: memref<64x128xbf16, #tpu.memory_space<vmem>>, %arg5: memref<256x128xf32, #tpu.memory_space<vmem>>, %arg6: memref<1x128xf32, #tpu.memory_space<vmem>>, %arg7: memref<1x128xf32, #tpu.memory_space<vmem>>) attributes {dimension_semantics = [#tpu.dimension_semantics<arbitrary>], iteration_bounds = array<i64: 2>, scalar_prefetch = 0 : i64, scratch_operands = 0 : i64, tpu.core_type = #tpu.core_type<tc>, window_params = [{transform_indices = @transform_0, window_bounds = array<i64: 256, 8>}, {pipeline_mode = #tpu.pipeline_mode<synchronous>, transform_indices = @transform_1, window_bounds = array<i64: 8, 64>}, {pipeline_mode = #tpu.pipeline_mode<synchronous>, transform_indices = @transform_2, window_bounds = array<i64: 1, 64>}, {pipeline_mode = #tpu.pipeline_mode<synchronous>, transform_indices = @transform_3, window_bounds = array<i64: 64, 128>}, {transform_indices = @transform_4, window_bounds = array<i64: 256, 128>}, {pipeline_mode = #tpu.pipeline_mode<synchronous>, transform_indices = @transform_5, window_bounds = array<i64: 1, 128>}, {pipeline_mode = #tpu.pipeline_mode<synchronous>, transform_indices = @transform_6, window_bounds = array<i64: 1, 128>}]} {
    %c0_i32 = arith.constant 0 : i32
    %0 = arith.cmpi eq, %arg0, %c0_i32 : i32
    %1 = arith.extui %0 : i1 to i32
    %c0_i32_0 = arith.constant 0 : i32
    %2 = arith.cmpi ne, %1, %c0_i32_0 : i32
    scf.if %2 {
      %cst_23 = arith.constant 0.000000e+00 : f32
      %39 = vector.broadcast %cst_23 : f32 to vector<1x128xf32>
      %c0_24 = arith.constant 0 : index
      %c0_25 = arith.constant 0 : index
      %40 = vector.load %arg6[%c0_24, %c0_25] : memref<1x128xf32, #tpu.memory_space<vmem>>, vector<1x128xf32>
      tpu.vector_store %arg6[%c0_24, %c0_25], %39 {strides = array<i32>} : memref<1x128xf32, #tpu.memory_space<vmem>>, vector<1x128xf32>,
      %cst_26 = arith.constant 0.000000e+00 : f32
      %41 = vector.broadcast %cst_26 : f32 to vector<1x128xf32>
      %c0_27 = arith.constant 0 : index
      %c0_28 = arith.constant 0 : index
      %42 = vector.load %arg7[%c0_27, %c0_28] : memref<1x128xf32, #tpu.memory_space<vmem>>, vector<1x128xf32>
      tpu.vector_store %arg7[%c0_27, %c0_28], %41 {strides = array<i32>} : memref<1x128xf32, #tpu.memory_space<vmem>>, vector<1x128xf32>,
    } else {
    }
    %c0 = arith.constant 0 : index
    %c0_1 = arith.constant 0 : index
    %3 = vector.load %arg1[%c0, %c0_1] : memref<256x8xbf16, #tpu.memory_space<vmem>>, vector<256x8xbf16>
    %c0_2 = arith.constant 0 : index
    %c0_3 = arith.constant 0 : index
    %4 = vector.load %arg2[%c0_2, %c0_3] : memref<8x64xbf16, #tpu.memory_space<vmem>>, vector<8x64xbf16>
    %cst = arith.constant dense<0.000000e+00> : vector<256x64xf32>
    %5 = tpu.matmul %3, %4, %cst {dimension_numbers = #tpu.dot_dimension_numbers<[1], [0], [0], [1], [0, 0, 1, 1], [], []>} : vector<256x8xbf16>, vector<8x64xbf16>, vector<256x64xf32> -> vector<256x64xf32>
    %c0_4 = arith.constant 0 : index
    %c0_5 = arith.constant 0 : index
    %6 = vector.load %arg3[%c0_4, %c0_5] : memref<1x64xf32, #tpu.memory_space<vmem>>, vector<1x64xf32>
    %7 = vector.broadcast %6 : vector<1x64xf32> to vector<256x64xf32>
    %8 = arith.addf %5, %7 : vector<256x64xf32>
    %cst_6 = arith.constant 0.000000e+00 : f32
    %9 = vector.broadcast %cst_6 : f32 to vector<256x64xf32>
    %10 = arith.cmpf oge, %8, %9 : vector<256x64xf32>
    %cst_7 = arith.constant 2.000000e-01 : f32
    %11 = vector.broadcast %cst_7 : f32 to vector<256x64xf32>
    %12 = arith.mulf %11, %8 : vector<256x64xf32>
    %13 = arith.select %10, %8, %12 : vector<256x64xi1>, vector<256x64xf32>
    %14 = arith.truncf %13 : vector<256x64xf32> to vector<256x64xbf16>
    %c0_8 = arith.constant 0 : index
    %c0_9 = arith.constant 0 : index
    %15 = vector.load %arg4[%c0_8, %c0_9] : memref<64x128xbf16, #tpu.memory_space<vmem>>, vector<64x128xbf16>
    %cst_10 = arith.constant dense<0.000000e+00> : vector<256x128xf32>
    %16 = tpu.matmul %14, %15, %cst_10 {dimension_numbers = #tpu.dot_dimension_numbers<[1], [0], [0], [1], [0, 0, 1, 1], [], []>} : vector<256x64xbf16>, vector<64x128xbf16>, vector<256x128xf32> -> vector<256x128xf32>
    %c0_11 = arith.constant 0 : index
    %c0_12 = arith.constant 0 : index
    %17 = vector.load %arg5[%c0_11, %c0_12] : memref<256x128xf32, #tpu.memory_space<vmem>>, vector<256x128xf32>
    tpu.vector_store %arg5[%c0_11, %c0_12], %16 {strides = array<i32>} : memref<256x128xf32, #tpu.memory_space<vmem>>, vector<256x128xf32>,
    %18 = tpu.iota {dimensions = array<i32: 0>} : vector<256x1xi32>
    %c256_i32 = arith.constant 256 : i32
    %19 = arith.muli %arg0, %c256_i32 : i32
    %20 = vector.broadcast %19 : i32 to vector<256x1xi32>
    %21 = arith.addi %18, %20 : vector<256x1xi32>
    %c512_i32 = arith.constant 512 : i32
    %22 = vector.broadcast %c512_i32 : i32 to vector<256x1xi32>
    %23 = arith.cmpi slt, %21, %22 : vector<256x1xi32>
    %24 = arith.extui %23 : vector<256x1xi1> to vector<256x1xi32>
    %25 = arith.sitofp %24 : vector<256x1xi32> to vector<256x1xf32>
    %26 = vector.broadcast %25 : vector<256x1xf32> to vector<256x128xf32>
    %27 = arith.mulf %16, %26 : vector<256x128xf32>
    %c0_13 = arith.constant 0 : index
    %c0_14 = arith.constant 0 : index
    %28 = vector.load %arg6[%c0_13, %c0_14] : memref<1x128xf32, #tpu.memory_space<vmem>>, vector<1x128xf32>
    %cst_15 = arith.constant dense<0.000000e+00> : vector<128xf32>
    %29 = vector.multi_reduction <add>, %27, %cst_15 [0] : vector<256x128xf32> to vector<128xf32>
    %30 = vector.shape_cast %29 : vector<128xf32> to vector<1x128xf32>
    %31 = arith.addf %28, %30 : vector<1x128xf32>
    %c0_16 = arith.constant 0 : index
    %c0_17 = arith.constant 0 : index
    %32 = vector.load %arg6[%c0_16, %c0_17] : memref<1x128xf32, #tpu.memory_space<vmem>>, vector<1x128xf32>
    tpu.vector_store %arg6[%c0_16, %c0_17], %31 {strides = array<i32>} : memref<1x128xf32, #tpu.memory_space<vmem>>, vector<1x128xf32>,
    %c0_18 = arith.constant 0 : index
    %c0_19 = arith.constant 0 : index
    %33 = vector.load %arg7[%c0_18, %c0_19] : memref<1x128xf32, #tpu.memory_space<vmem>>, vector<1x128xf32>
    %34 = arith.mulf %27, %16 : vector<256x128xf32>
    %cst_20 = arith.constant dense<0.000000e+00> : vector<128xf32>
    %35 = vector.multi_reduction <add>, %34, %cst_20 [0] : vector<256x128xf32> to vector<128xf32>
    %36 = vector.shape_cast %35 : vector<128xf32> to vector<1x128xf32>
    %37 = arith.addf %33, %36 : vector<1x128xf32>
    %c0_21 = arith.constant 0 : index
    %c0_22 = arith.constant 0 : index
    %38 = vector.load %arg7[%c0_21, %c0_22] : memref<1x128xf32, #tpu.memory_space<vmem>>, vector<1x128xf32>
    tpu.vector_store %arg7[%c0_21, %c0_22], %37 {strides = array<i32>} : memref<1x128xf32, #tpu.memory_space<vmem>>, vector<1x128xf32>,
    return
  }
  func.func @transform_0(%arg0: i32) -> (i32, i32) {
    %c0_i32 = arith.constant 0 : i32
    %c0_i32_0 = arith.constant 0 : i32
    return %arg0, %c0_i32 : i32, i32
  }
  func.func @transform_1(%arg0: i32) -> (i32, i32) {
    %c0_i32 = arith.constant 0 : i32
    %c0_i32_0 = arith.constant 0 : i32
    %c0_i32_1 = arith.constant 0 : i32
    return %c0_i32, %c0_i32_0 : i32, i32
  }
  func.func @transform_2(%arg0: i32) -> (i32, i32) {
    %c0_i32 = arith.constant 0 : i32
    %c0_i32_0 = arith.constant 0 : i32
    %c0_i32_1 = arith.constant 0 : i32
    return %c0_i32, %c0_i32_0 : i32, i32
  }
  func.func @transform_3(%arg0: i32) -> (i32, i32) {
    %c0_i32 = arith.constant 0 : i32
    %c0_i32_0 = arith.constant 0 : i32
    %c0_i32_1 = arith.constant 0 : i32
    return %c0_i32, %c0_i32_0 : i32, i32
  }
  func.func @transform_4(%arg0: i32) -> (i32, i32) {
    %c0_i32 = arith.constant 0 : i32
    %c0_i32_0 = arith.constant 0 : i32
    return %arg0, %c0_i32 : i32, i32
  }
  func.func @transform_5(%arg0: i32) -> (i32, i32) {
    %c0_i32 = arith.constant 0 : i32
    %c0_i32_0 = arith.constant 0 : i32
    %c0_i32_1 = arith.constant 0 : i32
    return %c0_i32, %c0_i32_0 : i32, i32
  }
  func.func @transform_6(%arg0: i32) -> (i32, i32) {
    %c0_i32 = arith.constant 0 : i32
    %c0_i32_0 = arith.constant 0 : i32
    %c0_i32_1 = arith.constant 0 : i32
    return %c0_i32, %c0_i32_0 : i32, i32
  }
}

</mosaic_0001>

<bundles_post_ra>
// kernel: tpu_custom_call.1
= control target key start
LH: loop header
LB: loop body
LE: loop exit
PB: predicated region body
PF: predicated region fallthrough
CT: control target
= control target key end

     0   :  { %12 = vsyncpa [#allocation3], 0  ;;  %s2242_s0 = inlined_call_operand.vmem [shape: bf16[512,8], index: 0, kind: input, shape index: {}]   ;;  %s2243_s1 = inlined_call_operand.vmem [shape: bf16[8,64], index: 1, kind: input, shape index: {}]   ;;  %s2244_s2 = inlined_call_operand.vmem [shape: f32[1,64], index: 2, kind: input, shape index: {}]   ;;  %s2245_s3 = inlined_call_operand.vmem [shape: bf16[64,128], index: 3, kind: input, shape index: {}]   ;;  %s2246_s4 = inlined_call_operand.hbm [shape: f32[512,128], index: 4, kind: output, shape index: {0}]   ;;  %s2247_s5 = inlined_call_operand.hbm [shape: f32[1,128], index: 5, kind: output, shape index: {1}]   ;;  %s2248_s6 = inlined_call_operand.hbm [shape: f32[1,128], index: 6, kind: output, shape index: {2}]  }
   0x1   :  { %14 = vsyncpa [#allocation3 + $0x1], 0 }
   0x2   :  { %15 = vsyncpa [#allocation5], 0  ;;  %s1851_s21 = smov 0   ;;  %s1853_s22 = smov 0  }
   0x3   :  { %s1855_s23 = smov 0   ;;  %s1857_s24 = smov 0  }
   0x4 LB: > { %s1872_s25 = sadd.s32 4294967295, %s1807_s24   ;;  %s1402_s26 = sadd.s32 4294967294, %s1807_s24   ;;  %s1807_s24 = sphi %s1857_s24, %s2254_s24   ;;  %s1803_s23 = sphi %s1855_s23, %s2253_s23   ;;  %s1799_s22 = sphi %s1853_s22, %s2252_s22   ;;  %s1795_s21 = sphi %s1851_s21, %s2251_s21  }
   0x5   : > { %s1876_s27 = sadd.s32 1, %s1807_s24   ;;  %s117_s28 = sadd.s32 1, %s1803_s23 }
   0x6   : > { %s114_s29 = ssub.s32 %s1807_s24, %s1876_s27  ;;  %p127_p0 = scmp.ne.s32.totalorder %s1803_s23, %s1799_s22 }
   0x7   : > { %p115_p1 = scmp.eq.s32.totalorder %s114_s29, 0  ;;  %p128_p2 = scmp.eq.s32.totalorder %s1872_s25, 1 }
   0x8   : > { %p133_p3 = scmp.ne.s32.totalorder %s1799_s22, %s1795_s21  ;;  %p134_p4 = scmp.eq.s32.totalorder %s1402_s26, 1 }
   0x9   : > { %s1887_s30 = scalar_select %p115_p1, %s1803_s23, %s117_s28  }
   0xa   : > { %p1891_p5 = por %p128_p2, %p127_p0  ;;  %p1895_p6 = por %p134_p4, %p133_p3 }
   0xb   : > { %p1405_p7 = scmp.ge.s32.totalorder %s1807_s24, 1  ;;  %p212_p8 = scmp.lt.s32.totalorder %s1807_s24, 3 }
   0xd   : > { %p213_p9 = pnand %p1405_p7, %p212_p8 }
   0xe   : > { %s235_s9 = sand.u32 (!%p213_p9), 1, %s1799_s22   ;;  %s1407_s10 = sshll.u32 (!%p213_p9), %s1872_s25, 5 }
   0xf   : > { %216 = sbr.rel (%p213_p9) target bundleno = 542 (0x21e), region = 36  ;;  %s1406_s11 = sshll.u32 (!%p213_p9), %s235_s9, 8 }
  0x10   : > { %p243_p10 = scmp.lt.s32.totalorder (!%p213_p9), %s1407_s10, 63  ;;  %s1910_s16 = scalar_lea.vmem (!%p213_p9), [#allocation2], %s1406_s11 }
  0x11   : > { %p1409_p11 = scmp.ne.s32.totalorder (!%p213_p9), %s1872_s25, 0 }
  0x14   : > { %s2256_s10 = smov (!%p243_p10, %s1407_s10), 63  ;;  %253 = sbr.rel (%p1409_p11) target bundleno = 27 (0x1b), region = 40 }
  0x15   : > { %s1408_s12 = sshll.u32 %s2256_s10, 2 }
  0x16   : > { %s1908_s15 = scalar_lea.vmem %s2242_s0, %s1408_s12 }
  0x19   : > { %v1809_v0 = vmov 0.0  }
  0x1a   : > { %254 = vst [vmem:[#allocation4] sm:$0x1] %v1809_v0  ;;  %255 = vst [vmem:[#allocation6] sm:$0x1] %v1809_v0 }
  0x1b PF: > { %v288_v1 = vld [vmem:[%s2243_s1] sm:$0xf]  ;;  %vm425_vm0 = vcmask 1043456   ;;  %vm376_vm1 = vcmask 64512   ;;  %v1676_v4 = vld [vmem:[%s1908_s15 + $0x8] sm:$0xff]   ;;  %v1677_v5 = vld [vmem:[%s1908_s15 + $0x10] sm:$0xff]  }
  0x1c   : > { %v1675_v2 = vld [vmem:[%s1908_s15] sm:$0xff]   ;;  %1617 = vmatprep.subr.msk.bf16.mxu0 %vm425_vm0, %v288_v1  ;;  %v427_v3 = vsel %vm425_vm0, %v288_v1, 0  ;;  %v1678_v6 = vld [vmem:[%s1908_s15 + $0x18] sm:$0xff]   ;;  %v1680_v8 = vld [vmem:[%s1908_s15 + $0x28] sm:$0xff]   ;;  %vm734_vm6 = vcmask 523264   ;;  %s1505_s17 = sshll.u32 %s1872_s25, 12 }
  0x1d   : > { %1544 = vmatpush3.bf16.msra.mxu0 %v427_v3  ;;  %1545 = vmatprep.mubr.msk.bf16.mxu0 %vm376_vm1, %v1675_v2  ;;  %v1679_v7 = vld [vmem:[%s1908_s15 + $0x20] sm:$0xff]   ;;  %v1681_v9 = vld [vmem:[%s1908_s15 + $0x30] sm:$0xff]   ;;  %v1691_v10 = vld [vmem:[%s2245_s3 + $0x18] sm:$0xff]   ;;  %s1297_s18 = sshll.u32 %s1910_s16, 4  ;;  %s2173_s26 = scalar_lea.hbm %s2246_s4, %s1505_s17  ;;  %s2175_s18 = int_to_ptr.vmem [resolvable:$true] %s1297_s18 }
  0x1e   : > { %1577 = vmatprep.subr.bf16.mxu1 %v1691_v10  ;;  %v1682_v11 = vld [vmem:[%s1908_s15 + $0x38] sm:$0xff]   ;;  %v1683_v12 = vld [vmem:[%s1908_s15 + $0x40] sm:$0xff]   ;;  %v1684_v13 = vld [vmem:[%s1908_s15 + $0x48] sm:$0xff]   ;;  %s2183_s28 = scalar_lea.sflag [#allocation3], %s235_s9  ;;  %s1695_s29 = scalar_lea.vmem %s2175_s18, 4096 }
  0x1f   : > { %1578 = vmatpush3.bf16.msra.mxu1 %v1691_v10  ;;  %v1685_v14 = vld [vmem:[%s1908_s15 + $0x50] sm:$0xff]   ;;  %v1686_v15 = vld [vmem:[%s1908_s15 + $0x58] sm:$0xff]   ;;  %v1687_v16 = vld [vmem:[%s1908_s15 + $0x60] sm:$0xff]   ;;  %p1696_p12 = scmp.ne.s32.totalorder %s2175_s18, %s1695_s29  ;;  %s1811_s10 = smov [#allocation2]  }
  0x20   : > { %1546 = vmatmul.mubr.msk.bf16.vlgmr.msra.gmra.mxu0 %vm376_vm1, %v1676_v4  ;;  %v1688_v17 = vld [vmem:[%s1908_s15 + $0x68] sm:$0xff]   ;;  %v1689_v18 = vld [vmem:[%s1908_s15 + $0x70] sm:$0xff]   ;;  %v1690_v19 = vld [vmem:[%s1908_s15 + $0x78] sm:$0xff]   ;;  %s1463_s15 = sshll.u32 %s1872_s25, 8  ;;  %s1699_s11 = sshll.u32 %s1811_s10, 4  ;;  %s1700_s11 = int_to_ptr.vmem [resolvable:$false] %s1699_s11 }
  0x21   : > { %1549 = vmatprep.mubr.msk.bf16.mxu0 %vm376_vm1, %v1677_v5  ;;  %v1692_v20 = vld [vmem:[%s2245_s3 + $0x10] sm:$0xff]   ;;  %v1693_v21 = vld [vmem:[%s2245_s3 + $0x8] sm:$0xff]   ;;  %v1694_v22 = vld [vmem:[%s2245_s3] sm:$0xff]   ;;  %p1697_p13 = pnand %p1696_p12, %p1891_p5  ;;  %s1701_s12 = scalar_lea.vmem %s1700_s11, 8192 }
  0x22   : > { %1579 = vmatprep.subr.bf16.mxu1 %v1692_v20  ;;  %v1963_v24 = vld [vmem:[%s2244_s2] ss:$0 sm:$0xff]  ;;  %p1702_p1 = scmp.lt.s32.totalorder %s2175_s18, %s1700_s11  ;;  %p1703_p3 = scmp.lt.s32.totalorder %s1701_s12, %s1695_s29 }
  0x23   : > { %1580 = vmatpush3.bf16.msra.mxu1 %v1692_v20  ;;  %p1698_p0 = pneg %p1697_p13 }
  0x24   : > { %1581 = vmatprep.subr.bf16.mxu1 %v1693_v21  ;;  %p1704_p4 = por %p1703_p3, %p1702_p1 }
  0x26   : > { %p1705_p7 = pnand %p1704_p4, %p1698_p0 }
  0x27   : > { %1582 = vmatpush3.bf16.msra.mxu1 %v1693_v21 }
  0x28   : > { %1550 = vmatmul.mubr.msk.bf16.gmra.mxu0 %vm376_vm1, %v1678_v6  ;;  %1583 = vmatprep.subr.bf16.mxu1 %v1694_v22 }
  0x29   : > { %1553 = vmatprep.mubr.msk.bf16.mxu0 %vm376_vm1, %v1679_v7 }
  0x2b   : > { %1584 = vmatpush3.bf16.msra.mxu1 %v1694_v22 }
  0x30   : > { %1554 = vmatmul.mubr.msk.bf16.gmra.mxu0 %vm376_vm1, %v1680_v8 }
  0x31   : > { %1557 = vmatprep.mubr.msk.bf16.mxu0 %vm376_vm1, %v1681_v9 }
  0x38   : > { %1558 = vmatmul.mubr.msk.bf16.gmra.mxu0 %vm376_vm1, %v1682_v11 }
  0x39   : > { %1561 = vmatprep.mubr.msk.bf16.mxu0 %vm376_vm1, %v1683_v12 }
  0x40   : > { %1562 = vmatmul.mubr.msk.bf16.gmra.mxu0 %vm376_vm1, %v1684_v13 }
  0x41   : > { %1565 = vmatprep.mubr.msk.bf16.mxu0 %vm376_vm1, %v1685_v14 }
  0x48   : > { %1566 = vmatmul.mubr.msk.bf16.gmra.mxu0 %vm376_vm1, %v1686_v15 }
  0x49   : > { %1569 = vmatprep.mubr.msk.bf16.mxu0 %vm376_vm1, %v1687_v16 }
  0x50   : > { %1570 = vmatmul.mubr.msk.bf16.gmra.mxu0 %vm376_vm1, %v1688_v17 }
  0x51   : > { %1573 = vmatprep.mubr.msk.bf16.mxu0 %vm376_vm1, %v1689_v18 }
  0x58   : > { %1574 = vmatmul.mubr.msk.bf16.gmra.mxu0 %vm376_vm1, %v1690_v19 }
  0xe0   : > { %v1547_v23 = vpop.f32.mrf.mxu0 }
  0xe1   : > { %v472_v27 = vadd.f32 %v1547_v23, %v1963_v24 }
  0xe2   : > { %v463_v25 = vpop.f32.mrf.mxu0 }
  0xe3   : > { %v464_v26 = vadd.f32 %v1963_v24, %v463_v25  ;;  %v624_v34 = vmul.f32 0.2, %v472_v27  ;;  %vm592_vm4 = vcmp.ge.f32.partialorder %v472_v27, 0.0 }
  0xe4   : > { %v1548_v28 = vpop.f32.mrf.mxu0 }
  0xe5   : > { %v475_v29 = vadd.f32 %v1548_v28, %v1963_v24  ;;  %v622_v31 = vmul.f32 0.2, %v464_v26  ;;  %vm590_vm3 = vcmp.ge.f32.partialorder %v464_v26, 0.0  ;;  %v656_v42 = vsel %vm592_vm4, %v472_v27, %v624_v34 }
  0xe6   : > { %v466_v30 = vpop.f32.mrf.mxu0 }
  0xe7   : > { %vm593_vm2 = vcmp.ge.f32.partialorder %v475_v29, 0.0  ;;  %v625_v32 = vmul.f32 0.2, %v475_v29  ;;  %v467_v33 = vadd.f32 %v1963_v24, %v466_v30  ;;  %v654_v40 = vsel %vm590_vm3, %v464_v26, %v622_v31 }
  0xe8   : > { %v1551_v35 = vpop.f32.mrf.mxu0 }
  0xe9   : > { %v623_v36 = vmul.f32 0.2, %v467_v33  ;;  %vm591_vm5 = vcmp.ge.f32.partialorder %v467_v33, 0.0  ;;  %v657_v37 = vsel %vm593_vm2, %v475_v29, %v625_v32  ;;  %v488_v43 = vadd.f32 %v1551_v35, %v1963_v24 }
  0xea   : > { %v479_v38 = vpop.f32.mrf.mxu0  ;;  %v687_v46 = vpack.c.bf16 %v657_v37, %v656_v42 }
  0xeb   : > { %v480_v39 = vadd.f32 %v1963_v24, %v479_v38  ;;  %v655_v41 = vsel %vm591_vm5, %v467_v33, %v623_v36  ;;  %v628_v52 = vmul.f32 0.2, %v488_v43  ;;  %vm596_vm9 = vcmp.ge.f32.partialorder %v488_v43, 0.0 }
  0xec   : > { %v1552_v44 = vpop.f32.mrf.mxu0  ;;  %v686_v45 = vpack.c.bf16 %v655_v41, %v654_v40 }
  0xed   : > { %v491_v47 = vadd.f32 %v1552_v44, %v1963_v24  ;;  %v626_v49 = vmul.f32 0.2, %v480_v39  ;;  %vm594_vm8 = vcmp.ge.f32.partialorder %v480_v39, 0.0  ;;  %v660_v60 = vsel %vm596_vm9, %v488_v43, %v628_v52 }
  0xee   : > { %v482_v48 = vpop.f32.mrf.mxu0  ;;  %1585 = vmatprep.mubr.msk.bf16.mxu1 %vm734_vm6, %v686_v45 }
  0xef   : > { %vm597_vm7 = vcmp.ge.f32.partialorder %v491_v47, 0.0  ;;  %v629_v50 = vmul.f32 0.2, %v491_v47  ;;  %v483_v51 = vadd.f32 %v1963_v24, %v482_v48  ;;  %1586 = vmatmul.mubr.msk.bf16.vlgmr.msra.gmra.mxu1 %vm734_vm6, %v687_v46  ;;  %v658_v57 = vsel %vm594_vm8, %v480_v39, %v626_v49 }
  0xf0   : > { %v1555_v53 = vpop.f32.mrf.mxu0 }
  0xf1   : > { %vm595_vm10 = vcmp.ge.f32.partialorder %v483_v51, 0.0  ;;  %v627_v54 = vmul.f32 0.2, %v483_v51  ;;  %v661_v55 = vsel %vm597_vm7, %v491_v47, %v629_v50  ;;  %v504_v62 = vadd.f32 %v1555_v53, %v1963_v24 }
  0xf2   : > { %v495_v56 = vpop.f32.mrf.mxu0  ;;  %v689_v0 = vpack.c.bf16 %v661_v55, %v660_v60 }
  0xf3   : > { %v659_v58 = vsel %vm595_vm10, %v483_v51, %v627_v54  ;;  %v496_v59 = vadd.f32 %v1963_v24, %v495_v56  ;;  %v632_v6 = vmul.f32 0.2, %v504_v62  ;;  %vm600_vm13 = vcmp.ge.f32.partialorder %v504_v62, 0.0 }
  0xf4   : > { %v688_v61 = vpack.c.bf16 %v659_v58, %v658_v57  ;;  %v1556_v63 = vpop.f32.mrf.mxu0 }
  0xf5   : > { %v507_v1 = vadd.f32 %v1556_v63, %v1963_v24  ;;  %v630_v3 = vmul.f32 0.2, %v496_v59  ;;  %vm598_vm12 = vcmp.ge.f32.partialorder %v496_v59, 0.0  ;;  %v664_v14 = vsel %vm600_vm13, %v504_v62, %v632_v6 }
  0xf6   : > { %v498_v2 = vpop.f32.mrf.mxu0  ;;  %1589 = vmatprep.mubr.msk.bf16.mxu1 %vm734_vm6, %v688_v61 }
  0xf7   : > { %vm601_vm11 = vcmp.ge.f32.partialorder %v507_v1, 0.0  ;;  %v633_v4 = vmul.f32 0.2, %v507_v1  ;;  %v499_v5 = vadd.f32 %v1963_v24, %v498_v2  ;;  %1590 = vmatmul.mubr.msk.bf16.gmra.mxu1 %vm734_vm6, %v689_v0  ;;  %v662_v11 = vsel %vm598_vm12, %v496_v59, %v630_v3 }
  0xf8   : > { %v1559_v7 = vpop.f32.mrf.mxu0 }
  0xf9   : > { %vm599_vm14 = vcmp.ge.f32.partialorder %v499_v5, 0.0  ;;  %v631_v8 = vmul.f32 0.2, %v499_v5  ;;  %v665_v9 = vsel %vm601_vm11, %v507_v1, %v633_v4  ;;  %v520_v16 = vadd.f32 %v1559_v7, %v1963_v24 }
  0xfa   : > { %v511_v10 = vpop.f32.mrf.mxu0  ;;  %v691_v18 = vpack.c.bf16 %v665_v9, %v664_v14 }
  0xfb   : > { %v663_v12 = vsel %vm599_vm14, %v499_v5, %v631_v8  ;;  %v512_v13 = vadd.f32 %v1963_v24, %v511_v10  ;;  %v636_v25 = vmul.f32 0.2, %v520_v16  ;;  %vm604_vm1 = vcmp.ge.f32.partialorder %v520_v16, 0.0 }
  0xfc   : > { %v690_v15 = vpack.c.bf16 %v663_v12, %v662_v11  ;;  %v1560_v17 = vpop.f32.mrf.mxu0 }
  0xfd   : > { %v523_v19 = vadd.f32 %v1560_v17, %v1963_v24  ;;  %v634_v21 = vmul.f32 0.2, %v512_v13  ;;  %vm602_vm0 = vcmp.ge.f32.partialorder %v512_v13, 0.0  ;;  %v668_v33 = vsel %vm604_vm1, %v520_v16, %v636_v25 }
  0xfe   : > { %v514_v20 = vpop.f32.mrf.mxu0  ;;  %1593 = vmatprep.mubr.msk.bf16.mxu1 %vm734_vm6, %v690_v15 }
  0xff   : > { %vm605_vm15 = vcmp.ge.f32.partialorder %v523_v19, 0.0  ;;  %v637_v22 = vmul.f32 0.2, %v523_v19  ;;  %v515_v23 = vadd.f32 %v1963_v24, %v514_v20  ;;  %1594 = vmatmul.mubr.msk.bf16.gmra.mxu1 %vm734_vm6, %v691_v18  ;;  %v666_v30 = vsel %vm602_vm0, %v512_v13, %v634_v21 }
 0x100   : > { %v1563_v26 = vpop.f32.mrf.mxu0 }
 0x101   : > { %vm603_vm2 = vcmp.ge.f32.partialorder %v515_v23, 0.0  ;;  %v635_v27 = vmul.f32 0.2, %v515_v23  ;;  %v669_v28 = vsel %vm605_vm15, %v523_v19, %v637_v22  ;;  %v536_v35 = vadd.f32 %v1563_v26, %v1963_v24 }
 0x102   : > { %v527_v29 = vpop.f32.mrf.mxu0  ;;  %v693_v37 = vpack.c.bf16 %v669_v28, %v668_v33 }
 0x103   : > { %v667_v31 = vsel %vm603_vm2, %v515_v23, %v635_v27  ;;  %v528_v32 = vadd.f32 %v1963_v24, %v527_v29  ;;  %v640_v43 = vmul.f32 0.2, %v536_v35  ;;  %vm608_vm5 = vcmp.ge.f32.partialorder %v536_v35, 0.0 }
 0x104   : > { %v692_v34 = vpack.c.bf16 %v667_v31, %v666_v30  ;;  %v1564_v36 = vpop.f32.mrf.mxu0 }
 0x105   : > { %v539_v38 = vadd.f32 %v1564_v36, %v1963_v24  ;;  %v638_v40 = vmul.f32 0.2, %v528_v32  ;;  %vm606_vm4 = vcmp.ge.f32.partialorder %v528_v32, 0.0  ;;  %v672_v51 = vsel %vm608_vm5, %v536_v35, %v640_v43 }
 0x106   : > { %v530_v39 = vpop.f32.mrf.mxu0  ;;  %1597 = vmatprep.mubr.msk.bf16.mxu1 %vm734_vm6, %v692_v34 }
 0x107   : > { %vm609_vm3 = vcmp.ge.f32.partialorder %v539_v38, 0.0  ;;  %v641_v41 = vmul.f32 0.2, %v539_v38  ;;  %v531_v42 = vadd.f32 %v1963_v24, %v530_v39  ;;  %1598 = vmatmul.mubr.msk.bf16.gmra.mxu1 %vm734_vm6, %v693_v37  ;;  %v670_v48 = vsel %vm606_vm4, %v528_v32, %v638_v40 }
 0x108   : > { %v1567_v44 = vpop.f32.mrf.mxu0 }
 0x109   : > { %vm607_vm7 = vcmp.ge.f32.partialorder %v531_v42, 0.0  ;;  %v639_v45 = vmul.f32 0.2, %v531_v42  ;;  %v673_v46 = vsel %vm609_vm3, %v539_v38, %v641_v41  ;;  %v552_v53 = vadd.f32 %v1567_v44, %v1963_v24 }
 0x10a   : > { %v543_v47 = vpop.f32.mrf.mxu0  ;;  %v695_v55 = vpack.c.bf16 %v673_v46, %v672_v51  ;;  %v2017_v44 = vstv %s1463_s15 }
 0x10b   : > { %v671_v49 = vsel %vm607_vm7, %v531_v42, %v639_v45  ;;  %v544_v50 = vadd.f32 %v1963_v24, %v543_v47  ;;  %v644_v61 = vmul.f32 0.2, %v552_v53  ;;  %vm612_vm10 = vcmp.ge.f32.partialorder %v552_v53, 0.0 }
 0x10c   : > { %v694_v52 = vpack.c.bf16 %v671_v49, %v670_v48  ;;  %v1568_v54 = vpop.f32.mrf.mxu0  ;;  %v976_v42 = vlaneseq }
 0x10d   : > { %v555_v56 = vadd.f32 %v1568_v54, %v1963_v24  ;;  %v642_v58 = vmul.f32 0.2, %v544_v50  ;;  %vm610_vm9 = vcmp.ge.f32.partialorder %v544_v50, 0.0  ;;  %v676_v5 = vsel %vm612_vm10, %v552_v53, %v644_v61 }
 0x10e   : > { %v546_v57 = vpop.f32.mrf.mxu0  ;;  %1601 = vmatprep.mubr.msk.bf16.mxu1 %vm734_vm6, %v694_v52 }
 0x10f   : > { %vm613_vm8 = vcmp.ge.f32.partialorder %v555_v56, 0.0  ;;  %v645_v59 = vmul.f32 0.2, %v555_v56  ;;  %v547_v60 = vadd.f32 %v1963_v24, %v546_v57  ;;  %1602 = vmatmul.mubr.msk.bf16.gmra.mxu1 %vm734_vm6, %v695_v55  ;;  %v674_v2 = vsel %vm610_vm9, %v544_v50, %v642_v58 }
 0x110   : > { %v1571_v62 = vpop.f32.mrf.mxu0  ;;  %v1810_v58 = vmov 0.0  }
 0x111   : > { %vm611_vm11 = vcmp.ge.f32.partialorder %v547_v60, 0.0  ;;  %v643_v63 = vmul.f32 0.2, %v547_v60  ;;  %v677_v0 = vsel %vm613_vm8, %v555_v56, %v645_v59  ;;  %v568_v7 = vadd.f32 %v1571_v62, %v1963_v24 }
 0x112   : > { %v559_v1 = vpop.f32.mrf.mxu0  ;;  %v697_v9 = vpack.c.bf16 %v677_v0, %v676_v5 }
 0x113   : > { %v675_v3 = vsel %vm611_vm11, %v547_v60, %v643_v63  ;;  %v560_v4 = vadd.f32 %v1963_v24, %v559_v1  ;;  %v648_v15 = vmul.f32 0.2, %v568_v7  ;;  %vm616_vm14 = vcmp.ge.f32.partialorder %v568_v7, 0.0 }
 0x114   : > { %v696_v6 = vpack.c.bf16 %v675_v3, %v674_v2  ;;  %v1572_v8 = vpop.f32.mrf.mxu0 }
 0x115   : > { %v571_v10 = vadd.f32 %v1572_v8, %v1963_v24  ;;  %v646_v12 = vmul.f32 0.2, %v560_v4  ;;  %vm614_vm13 = vcmp.ge.f32.partialorder %v560_v4, 0.0  ;;  %v680_v23 = vsel %vm616_vm14, %v568_v7, %v648_v15 }
 0x116   : > { %v562_v11 = vpop.f32.mrf.mxu0  ;;  %1605 = vmatprep.mubr.msk.bf16.mxu1 %vm734_vm6, %v696_v6 }
 0x117   : > { %vm617_vm12 = vcmp.ge.f32.partialorder %v571_v10, 0.0  ;;  %v649_v13 = vmul.f32 0.2, %v571_v10  ;;  %v563_v14 = vadd.f32 %v1963_v24, %v562_v11  ;;  %1606 = vmatmul.mubr.msk.bf16.gmra.mxu1 %vm734_vm6, %v697_v9  ;;  %v678_v20 = vsel %vm614_vm13, %v560_v4, %v646_v12 }
 0x118   : > { %v1575_v16 = vpop.f32.mrf.mxu0 }
 0x119   : > { %vm615_vm15 = vcmp.ge.f32.partialorder %v563_v14, 0.0  ;;  %v647_v17 = vmul.f32 0.2, %v563_v14  ;;  %v681_v18 = vsel %vm617_vm12, %v571_v10, %v649_v13  ;;  %v584_v26 = vadd.f32 %v1575_v16, %v1963_v24 }
 0x11a   : > { %v575_v19 = vpop.f32.mrf.mxu0  ;;  %v699_v28 = vpack.c.bf16 %v681_v18, %v680_v23 }
 0x11b   : > { %v679_v21 = vsel %vm615_vm15, %v563_v14, %v647_v17  ;;  %v576_v22 = vadd.f32 %v1963_v24, %v575_v19  ;;  %v652_v34 = vmul.f32 0.2, %v584_v26  ;;  %vm620_vm2 = vcmp.ge.f32.partialorder %v584_v26, 0.0 }
 0x11c   : > { %v698_v25 = vpack.c.bf16 %v679_v21, %v678_v20  ;;  %v1576_v27 = vpop.f32.mrf.mxu0 }
 0x11d   : > { %v587_v29 = vadd.f32 %v1576_v27, %v1963_v24  ;;  %v650_v31 = vmul.f32 0.2, %v576_v22  ;;  %vm618_vm1 = vcmp.ge.f32.partialorder %v576_v22, 0.0  ;;  %v684_v39 = vsel %vm620_vm2, %v584_v26, %v652_v34 }
 0x11e   : > { %v578_v30 = vpop.f32.mrf.mxu0  ;;  %1609 = vmatprep.mubr.msk.bf16.mxu1 %vm734_vm6, %v698_v25 }
 0x11f   : > { %vm621_vm0 = vcmp.ge.f32.partialorder %v587_v29, 0.0  ;;  %v653_v32 = vmul.f32 0.2, %v587_v29  ;;  %v579_v33 = vadd.f32 %v1963_v24, %v578_v30  ;;  %1610 = vmatmul.mubr.msk.bf16.gmra.mxu1 %vm734_vm6, %v699_v28  ;;  %v682_v37 = vsel %vm618_vm1, %v576_v22, %v650_v31 }
 0x120   : > { %v2013_v24 = vshrl.u32 %v976_v42, 7 }
 0x121   : > { %vm619_vm3 = vcmp.ge.f32.partialorder %v579_v33, 0.0  ;;  %v651_v35 = vmul.f32 0.2, %v579_v33  ;;  %v685_v36 = vsel %vm621_vm0, %v587_v29, %v653_v32 }
 0x122   : > { %v701_v41 = vpack.c.bf16 %v685_v36, %v684_v39  ;;  %v979_v43 = vadd.s32 16, %v2013_v24  ;;  %v978_v45 = vadd.s32 8, %v2013_v24  ;;  %v1011_v46 = vadd.s32 %v2017_v44, %v2013_v24 }
 0x123   : > { %v683_v38 = vsel %vm619_vm3, %v579_v33, %v651_v35  ;;  %v980_v47 = vadd.s32 24, %v2013_v24  ;;  %v981_v48 = vadd.s32 32, %v2013_v24  ;;  %v983_v51 = vadd.s32 48, %v2013_v24 }
 0x124   : > { %v700_v40 = vpack.c.bf16 %v683_v38, %v682_v37  ;;  %v1013_v49 = vadd.s32 %v2017_v44, %v979_v43  ;;  %v1012_v50 = vadd.s32 %v2017_v44, %v978_v45  ;;  %v984_v54 = vadd.s32 56, %v2013_v24 }
 0x125   : > { %v1014_v52 = vadd.s32 %v2017_v44, %v980_v47  ;;  %v1015_v53 = vadd.s32 %v2017_v44, %v981_v48  ;;  %v982_v55 = vadd.s32 40, %v2013_v24  ;;  %v1017_v60 = vadd.s32 %v2017_v44, %v983_v51 }
 0x126   : > { %1613 = vmatprep.mubr.msk.bf16.mxu1 %vm734_vm6, %v700_v40  ;;  %vm1045_vm4 = vcmp.lt.s32.totalorder %v1013_v49, 512  ;;  %vm1044_vm5 = vcmp.lt.s32.totalorder %v1012_v50, 512  ;;  %v1018_v61 = vadd.s32 %v2017_v44, %v984_v54  ;;  %v987_v2 = vadd.s32 80, %v2013_v24 }
 0x127   : > { %1614 = vmatmul.mubr.msk.bf16.gmra.mxu1 %vm734_vm6, %v701_v41  ;;  %vm1043_vm6 = vcmp.lt.s32.totalorder %v1011_v46, 512  ;;  %vm1046_vm7 = vcmp.lt.s32.totalorder %v1014_v52, 512  ;;  %vm1047_vm8 = vcmp.lt.s32.totalorder %v1015_v53, 512  ;;  %v1016_v62 = vadd.s32 %v2017_v44, %v982_v55 }
 0x128   : > { %v1464_v59 = vsel %vm1043_vm6, 1.0, %v1810_v58  ;;  %v1466_v63 = vsel %vm1045_vm4, 1.0, %v1810_v58  ;;  %v1465_v1 = vsel %vm1044_vm5, 1.0, %v1810_v58  ;;  %v985_v3 = vadd.s32 64, %v2013_v24 }
 0x129   : > { %v1467_v5 = vsel %vm1046_vm7, 1.0, %v1810_v58  ;;  %vm1049_vm9 = vcmp.lt.s32.totalorder %v1017_v60, 512  ;;  %v1468_v7 = vsel %vm1047_vm8, 1.0, %v1810_v58  ;;  %vm1050_vm10 = vcmp.lt.s32.totalorder %v1018_v61, 512 }
 0x12a   : > { %vm1048_vm11 = vcmp.lt.s32.totalorder %v1016_v62, 512  ;;  %v1021_v11 = vadd.s32 %v2017_v44, %v987_v2  ;;  %v1019_v12 = vadd.s32 %v2017_v44, %v985_v3  ;;  %v988_v13 = vadd.s32 88, %v2013_v24 }
 0x12b   : > { %v986_v14 = vadd.s32 72, %v2013_v24  ;;  %v1470_v19 = vsel %vm1049_vm9, 1.0, %v1810_v58  ;;  %v1471_v21 = vsel %vm1050_vm10, 1.0, %v1810_v58  ;;  %v989_v22 = vadd.s32 96, %v2013_v24 }
 0x12c   : > { %v1469_v29 = vsel %vm1048_vm11, 1.0, %v1810_v58  ;;  %vm1053_vm12 = vcmp.lt.s32.totalorder %v1021_v11, 512  ;;  %vm1051_vm13 = vcmp.lt.s32.totalorder %v1019_v12, 512  ;;  %v1022_v34 = vadd.s32 %v2017_v44, %v988_v13 }
 0x12d   : > { %v1020_v30 = vadd.s32 %v2017_v44, %v986_v14  ;;  %v991_v37 = vadd.s32 112, %v2013_v24  ;;  %v1023_v38 = vadd.s32 %v2017_v44, %v989_v22  ;;  %v992_v39 = vadd.s32 120, %v2013_v24 }
 0x12e   : > { %v1474_v46 = vsel %vm1053_vm12, 1.0, %v1810_v58  ;;  %v1472_v47 = vsel %vm1051_vm13, 1.0, %v1810_v58  ;;  %v990_v48 = vadd.s32 104, %v2013_v24  ;;  %vm1054_vm15 = vcmp.lt.s32.totalorder %v1022_v34, 512 }
 0x12f   : > { %vm1052_vm14 = vcmp.lt.s32.totalorder %v1020_v30, 512  ;;  %v1025_v54 = vadd.s32 %v2017_v44, %v991_v37  ;;  %vm1055_vm0 = vcmp.lt.s32.totalorder %v1023_v38, 512  ;;  %v1026_v55 = vadd.s32 %v2017_v44, %v992_v39 }
 0x130   : > { %v1473_v62 = vsel %vm1052_vm14, 1.0, %v1810_v58 }
 0x131   : > { %vm1057_vm1 = vcmp.lt.s32.totalorder %v1025_v54, 512  ;;  %vm1058_vm2 = vcmp.lt.s32.totalorder %v1026_v55, 512 }
 0x1af   : > { %v1587_v56 = vpop.f32.mrf.mxu1 }
 0x1b0   : > { %946 = vst [vmem:[%s1910_s16 + $0x10] sm:$0xff] %v1587_v56  ;;  %v1141_v8 = vmul.f32 %v1587_v56, %v1466_v63  ;;  %v1024_v63 = vadd.s32 %v2017_v44, %v990_v48 }
 0x1b1   : > { %v817_v57 = vpop.f32.mrf.mxu1 }
 0x1b2   : > { %944 = vst [vmem:[%s1910_s16] sm:$0xff] %v817_v57  ;;  %v1139_v4 = vmul.f32 %v1464_v59, %v817_v57  ;;  %v1214_v23 = vmul.f32 %v1587_v56, %v1141_v8  ;;  %vm1056_vm3 = vcmp.lt.s32.totalorder %v1024_v63, 512 }
 0x1b3   : > { %v1588_v0 = vpop.f32.mrf.mxu1 }
 0x1b4   : > { %947 = vst [vmem:[%s1910_s16 + $0x18] sm:$0xff] %v1588_v0  ;;  %v1212_v15 = vmul.f32 %v1139_v4, %v817_v57  ;;  %v1142_v16 = vmul.f32 %v1588_v0, %v1467_v5  ;;  %v1475_v5 = vsel %vm1054_vm15, 1.0, %v1810_v58 }
 0x1b5   : > { %v820_v6 = vpop.f32.mrf.mxu1 }
 0x1b6   : > { %945 = vst [vmem:[%s1910_s16 + $0x8] sm:$0xff] %v820_v6  ;;  %v1140_v9 = vmul.f32 %v1465_v1, %v820_v6  ;;  %v1215_v31 = vmul.f32 %v1588_v0, %v1142_v16  ;;  %v995_v0 = vadd.s32 144, %v2013_v24  ;;  %v993_v1 = vadd.s32 128, %v2013_v24 }
 0x1b7   : > { %v1591_v10 = vpop.f32.mrf.mxu1 }
 0x1b8   : > { %v1172_v17 = vadd.f32 %v1140_v9, %v1139_v4  ;;  %v1213_v18 = vmul.f32 %v1140_v9, %v820_v6  ;;  %950 = vst [vmem:[%s1910_s16 + $0x30] sm:$0xff] %v1591_v10  ;;  %v1145_v35 = vmul.f32 %v1591_v10, %v1470_v19  ;;  %v1029_v14 = vadd.s32 %v2017_v44, %v995_v0 }
 0x1b9   : > { %v833_v20 = vpop.f32.mrf.mxu1 }
 0x1ba   : > { %v1173_v25 = vadd.f32 %v1172_v17, %v1141_v8  ;;  %v1244_v26 = vadd.f32 %v1213_v18, %v1212_v15  ;;  %948 = vst [vmem:[%s1910_s16 + $0x20] sm:$0xff] %v833_v20  ;;  %v1143_v27 = vmul.f32 %v1468_v7, %v833_v20  ;;  %v1218_v56 = vmul.f32 %v1591_v10, %v1145_v35 }
 0x1bb   : > { %v1592_v28 = vpop.f32.mrf.mxu1  ;;  %v1476_v8 = vsel %vm1055_vm0, 1.0, %v1810_v58  ;;  %v1027_v15 = vadd.s32 %v2017_v44, %v993_v1  ;;  %vm1061_vm6 = vcmp.lt.s32.totalorder %v1029_v14, 512 }
 0x1bc   : > { %v1245_v32 = vadd.f32 %v1244_v26, %v1214_v23  ;;  %v1174_v33 = vadd.f32 %v1173_v25, %v1142_v16  ;;  %951 = vst [vmem:[%s1910_s16 + $0x38] sm:$0xff] %v1592_v28  ;;  %v1216_v41 = vmul.f32 %v1143_v27, %v833_v20  ;;  %v1146_v50 = vmul.f32 %v1592_v28, %v1471_v21 }
 0x1bd   : > { %v836_v36 = vpop.f32.mrf.mxu1  ;;  %v994_v16 = vadd.s32 136, %v2013_v24  ;;  %v1478_v21 = vsel %vm1057_vm1, 1.0, %v1810_v58  ;;  %v996_v23 = vadd.s32 152, %v2013_v24  ;;  %v997_v25 = vadd.s32 160, %v2013_v24 }
 0x1be   : > { %v1175_v40 = vadd.f32 %v1174_v33, %v1143_v27  ;;  %v1246_v42 = vadd.f32 %v1245_v32, %v1215_v31  ;;  %949 = vst [vmem:[%s1910_s16 + $0x28] sm:$0xff] %v836_v36  ;;  %v1144_v43 = vmul.f32 %v1469_v29, %v836_v36  ;;  %v1219_v2 = vmul.f32 %v1592_v28, %v1146_v50 }
 0x1bf   : > { %v1595_v45 = vpop.f32.mrf.mxu1  ;;  %v1479_v31 = vsel %vm1058_vm2, 1.0, %v1810_v58  ;;  %v1477_v32 = vsel %vm1056_vm3, 1.0, %v1810_v58  ;;  %v1028_v33 = vadd.s32 %v2017_v44, %v994_v16  ;;  %vm1059_vm4 = vcmp.lt.s32.totalorder %v1027_v15, 512 }
 0x1c0   : > { %v1247_v49 = vadd.f32 %v1246_v42, %v1216_v41  ;;  %v1176_v51 = vadd.f32 %v1175_v40, %v1144_v43  ;;  %v1217_v52 = vmul.f32 %v1144_v43, %v836_v36  ;;  %954 = vst [vmem:[%s1910_s16 + $0x50] sm:$0xff] %v1595_v45  ;;  %v1149_v6 = vmul.f32 %v1595_v45, %v1474_v46 }
 0x1c1   : > { %v849_v53 = vpop.f32.mrf.mxu1  ;;  %v1030_v39 = vadd.s32 %v2017_v44, %v996_v23  ;;  %v999_v40 = vadd.s32 176, %v2013_v24  ;;  %v1031_v41 = vadd.s32 %v2017_v44, %v997_v25  ;;  %v1480_v48 = vsel %vm1059_vm4, 1.0, %v1810_v58 }
 0x1c2   : > { %v1177_v57 = vadd.f32 %v1176_v51, %v1145_v35  ;;  %v1248_v59 = vadd.f32 %v1247_v49, %v1217_v52  ;;  %952 = vst [vmem:[%s1910_s16 + $0x40] sm:$0xff] %v849_v53  ;;  %v1147_v60 = vmul.f32 %v1472_v47, %v849_v53  ;;  %v1222_v26 = vmul.f32 %v1595_v45, %v1149_v6 }
 0x1c3   : > { %v1596_v61 = vpop.f32.mrf.mxu1  ;;  %vm1060_vm5 = vcmp.lt.s32.totalorder %v1028_v33, 512  ;;  %v1000_v49 = vadd.s32 184, %v2013_v24  ;;  %v1482_v55 = vsel %vm1061_vm6, 1.0, %v1810_v58  ;;  %vm1062_vm7 = vcmp.lt.s32.totalorder %v1030_v39, 512 }
 0x1c4   : > { %v1249_v3 = vadd.f32 %v1248_v59, %v1218_v56  ;;  %v1178_v4 = vadd.f32 %v1177_v57, %v1146_v50  ;;  %955 = vst [vmem:[%s1910_s16 + $0x58] sm:$0xff] %v1596_v61  ;;  %v1220_v10 = vmul.f32 %v1147_v60, %v849_v53  ;;  %v1150_v18 = vmul.f32 %v1596_v61, %v1475_v5 }
 0x1c5   : > { %v852_v7 = vpop.f32.mrf.mxu1  ;;  %v998_v50 = vadd.s32 168, %v2013_v24  ;;  %v1033_v57 = vadd.s32 %v2017_v44, %v999_v40  ;;  %vm1063_vm8 = vcmp.lt.s32.totalorder %v1031_v41, 512  ;;  %v1481_v0 = vsel %vm1060_vm5, 1.0, %v1810_v58 }
 0x1c6   : > { %v1179_v9 = vadd.f32 %v1178_v4, %v1147_v60  ;;  %v1250_v11 = vadd.f32 %v1249_v3, %v1219_v2  ;;  %953 = vst [vmem:[%s1910_s16 + $0x48] sm:$0xff] %v852_v7  ;;  %v1148_v12 = vmul.f32 %v1473_v62, %v852_v7  ;;  %v1223_v34 = vmul.f32 %v1596_v61, %v1150_v18 }
 0x1c7   : > { %v1599_v13 = vpop.f32.mrf.mxu1  ;;  %v1034_v1 = vadd.s32 %v2017_v44, %v1000_v49  ;;  %v1032_v2 = vadd.s32 %v2017_v44, %v998_v50  ;;  %v1001_v3 = vadd.s32 192, %v2013_v24  ;;  %vm1065_vm9 = vcmp.lt.s32.totalorder %v1033_v57, 512 }
 0x1c8   : > { %v1251_v17 = vadd.f32 %v1250_v11, %v1220_v10  ;;  %v1180_v19 = vadd.f32 %v1179_v9, %v1148_v12  ;;  %v1221_v20 = vmul.f32 %v1148_v12, %v852_v7  ;;  %958 = vst [vmem:[%s1910_s16 + $0x70] sm:$0xff] %v1599_v13  ;;  %v1153_v37 = vmul.f32 %v1599_v13, %v1478_v21 }
 0x1c9   : > { %v865_v22 = vpop.f32.mrf.mxu1  ;;  %v1483_v7 = vsel %vm1062_vm7, 1.0, %v1810_v58  ;;  %v1484_v10 = vsel %vm1063_vm8, 1.0, %v1810_v58  ;;  %v1003_v11 = vadd.s32 208, %v2013_v24  ;;  %vm1066_vm10 = vcmp.lt.s32.totalorder %v1034_v1, 512 }
 0x1ca   : > { %v1181_v27 = vadd.f32 %v1180_v19, %v1149_v6  ;;  %v1252_v28 = vadd.f32 %v1251_v17, %v1221_v20  ;;  %956 = vst [vmem:[%s1910_s16 + $0x60] sm:$0xff] %v865_v22  ;;  %v1151_v29 = vmul.f32 %v1476_v8, %v865_v22  ;;  %v1226_v59 = vmul.f32 %v1599_v13, %v1153_v37 }
 0x1cb   : > { %v1600_v30 = vpop.f32.mrf.mxu1  ;;  %vm1064_vm11 = vcmp.lt.s32.totalorder %v1032_v2, 512  ;;  %v1035_v17 = vadd.s32 %v2017_v44, %v1001_v3  ;;  %v1486_v23 = vsel %vm1065_vm9, 1.0, %v1810_v58  ;;  %v1487_v33 = vsel %vm1066_vm10, 1.0, %v1810_v58 }
 0x1cc   : > { %v1253_v35 = vadd.f32 %v1252_v28, %v1222_v26  ;;  %v1182_v36 = vadd.f32 %v1181_v27, %v1150_v18  ;;  %959 = vst [vmem:[%s1910_s16 + $0x78] sm:$0xff] %v1600_v30  ;;  %v1224_v43 = vmul.f32 %v1151_v29, %v865_v22  ;;  %v1154_v52 = vmul.f32 %v1600_v30, %v1479_v31 }
 0x1cd   : > { %v868_v38 = vpop.f32.mrf.mxu1  ;;  %v1002_v18 = vadd.s32 200, %v2013_v24  ;;  %v1037_v26 = vadd.s32 %v2017_v44, %v1003_v11  ;;  %v1004_v27 = vadd.s32 216, %v2013_v24  ;;  %vm1067_vm12 = vcmp.lt.s32.totalorder %v1035_v17, 512 }
 0x1ce   : > { %v1183_v42 = vadd.f32 %v1182_v36, %v1151_v29  ;;  %v1254_v45 = vadd.f32 %v1253_v35, %v1223_v34  ;;  %957 = vst [vmem:[%s1910_s16 + $0x68] sm:$0xff] %v868_v38  ;;  %v1152_v46 = vmul.f32 %v1477_v32, %v868_v38  ;;  %v1227_v4 = vmul.f32 %v1600_v30, %v1154_v52 }
 0x1cf   : > { %v1603_v47 = vpop.f32.mrf.mxu1  ;;  %v1485_v34 = vsel %vm1064_vm11, 1.0, %v1810_v58  ;;  %v1036_v35 = vadd.s32 %v2017_v44, %v1002_v18  ;;  %v1005_v36 = vadd.s32 224, %v2013_v24  ;;  %vm1069_vm13 = vcmp.lt.s32.totalorder %v1037_v26, 512 }
 0x1d0   : > { %v1255_v51 = vadd.f32 %v1254_v45, %v1224_v43  ;;  %v1184_v53 = vadd.f32 %v1183_v42, %v1152_v46  ;;  %v1225_v54 = vmul.f32 %v1152_v46, %v868_v38  ;;  %962 = vst [vmem:[%s1910_s16 + $0x90] sm:$0xff] %v1603_v47  ;;  %v1157_v8 = vmul.f32 %v1603_v47, %v1482_v55 }
 0x1d1   : > { %v881_v56 = vpop.f32.mrf.mxu1  ;;  %v1038_v42 = vadd.s32 %v2017_v44, %v1004_v27  ;;  %v1007_v43 = vadd.s32 240, %v2013_v24  ;;  %v1488_v50 = vsel %vm1067_vm12, 1.0, %v1810_v58  ;;  %vm1068_vm14 = vcmp.lt.s32.totalorder %v1036_v35, 512 }
 0x1d2   : > { %v1185_v60 = vadd.f32 %v1184_v53, %v1153_v37  ;;  %v1256_v61 = vadd.f32 %v1255_v51, %v1225_v54  ;;  %960 = vst [vmem:[%s1910_s16 + $0x80] sm:$0xff] %v881_v56  ;;  %v1155_v62 = vmul.f32 %v1480_v48, %v881_v56  ;;  %v1230_v28 = vmul.f32 %v1603_v47, %v1157_v8 }
 0x1d3   : > { %v1604_v63 = vpop.f32.mrf.mxu1  ;;  %v1039_v51 = vadd.s32 %v2017_v44, %v1005_v36  ;;  %v1490_v57 = vsel %vm1069_vm13, 1.0, %v1810_v58  ;;  %vm1070_vm15 = vcmp.lt.s32.totalorder %v1038_v42, 512  ;;  %v1489_v3 = vsel %vm1068_vm14, 1.0, %v1810_v58 }
 0x1d4   : > { %v1257_v5 = vadd.f32 %v1256_v61, %v1226_v59  ;;  %v1186_v6 = vadd.f32 %v1185_v60, %v1154_v52  ;;  %963 = vst [vmem:[%s1910_s16 + $0x98] sm:$0xff] %v1604_v63  ;;  %v1228_v13 = vmul.f32 %v1155_v62, %v881_v56  ;;  %v1158_v20 = vmul.f32 %v1604_v63, %v1483_v7 }
 0x1d5   : > { %v884_v9 = vpop.f32.mrf.mxu1  ;;  %v1006_v52 = vadd.s32 232, %v2013_v24  ;;  %v1041_v60 = vadd.s32 %v2017_v44, %v1007_v43  ;;  %v1008_v61 = vadd.s32 248, %v2013_v24  ;;  %vm1071_vm0 = vcmp.lt.s32.totalorder %v1039_v51, 512 }
 0x1d6   : > { %v1187_v12 = vadd.f32 %v1186_v6, %v1155_v62  ;;  %v1258_v14 = vadd.f32 %v1257_v5, %v1227_v4  ;;  %961 = vst [vmem:[%s1910_s16 + $0x88] sm:$0xff] %v884_v9  ;;  %v1156_v15 = vmul.f32 %v1481_v0, %v884_v9  ;;  %v1231_v37 = vmul.f32 %v1604_v63, %v1158_v20 }
 0x1d7   : > { %v1607_v16 = vpop.f32.mrf.mxu1  ;;  %v1040_v4 = vadd.s32 %v2017_v44, %v1006_v52  ;;  %v1491_v24 = vsel %vm1070_vm15, 1.0, %v1810_v58  ;;  %vm1073_vm1 = vcmp.lt.s32.totalorder %v1041_v60, 512 }
 0x1d8   : > { %v1259_v19 = vadd.f32 %v1258_v14, %v1228_v13  ;;  %v1188_v21 = vadd.f32 %v1187_v12, %v1156_v15  ;;  %v1229_v22 = vmul.f32 %v1156_v15, %v884_v9  ;;  %966 = vst [vmem:[%s1910_s16 + $0xb0] sm:$0xff] %v1607_v16  ;;  %v1161_v40 = vmul.f32 %v1607_v16, %v1486_v23 }
 0x1d9   : > { %v897_v25 = vpop.f32.mrf.mxu1  ;;  %vm1072_vm2 = vcmp.lt.s32.totalorder %v1040_v4, 512 }
 0x1da   : > { %v1189_v29 = vadd.f32 %v1188_v21, %v1157_v8  ;;  %v1260_v30 = vadd.f32 %v1259_v19, %v1229_v22  ;;  %964 = vst [vmem:[%s1910_s16 + $0xa0] sm:$0xff] %v897_v25  ;;  %v1159_v31 = vmul.f32 %v1484_v10, %v897_v25  ;;  %v1234_v62 = vmul.f32 %v1607_v16, %v1161_v40 }
 0x1db   : > { %v1608_v32 = vpop.f32.mrf.mxu1  ;;  %v1042_v10 = vadd.s32 %v2017_v44, %v1008_v61  ;;  %v1492_v16 = vsel %vm1071_vm0, 1.0, %v1810_v58  ;;  %v1494_v44 = vsel %vm1073_vm1, 1.0, %v1810_v58 }
 0x1dc   : > { %v1261_v38 = vadd.f32 %v1260_v30, %v1230_v28  ;;  %v1190_v39 = vadd.f32 %v1189_v29, %v1158_v20  ;;  %967 = vst [vmem:[%s1910_s16 + $0xb8] sm:$0xff] %v1608_v32  ;;  %v1232_v46 = vmul.f32 %v1159_v31, %v897_v25  ;;  %v1162_v54 = vmul.f32 %v1608_v32, %v1487_v33 }
 0x1dd   : > { %v900_v41 = vpop.f32.mrf.mxu1  ;;  %vm1074_vm3 = vcmp.lt.s32.totalorder %v1042_v10, 512  ;;  %v1493_v28 = vsel %vm1072_vm2, 1.0, %v1810_v58 }
 0x1de   : > { %v1191_v45 = vadd.f32 %v1190_v39, %v1159_v31  ;;  %v1262_v47 = vadd.f32 %v1261_v38, %v1231_v37  ;;  %965 = vst [vmem:[%s1910_s16 + $0xa8] sm:$0xff] %v900_v41  ;;  %v1160_v48 = vmul.f32 %v1485_v34, %v900_v41  ;;  %v1235_v5 = vmul.f32 %v1608_v32, %v1162_v54 }
 0x1df   : > { %v1611_v49 = vpop.f32.mrf.mxu1  ;;  %v1495_v33 = vsel %vm1074_vm3, 1.0, %v1810_v58 }
 0x1e0   : > { %v1263_v53 = vadd.f32 %v1262_v47, %v1232_v46  ;;  %v1192_v55 = vadd.f32 %v1191_v45, %v1160_v48  ;;  %v1233_v56 = vmul.f32 %v1160_v48, %v900_v41  ;;  %970 = vst [vmem:[%s1910_s16 + $0xd0] sm:$0xff] %v1611_v49  ;;  %v1165_v8 = vmul.f32 %v1611_v49, %v1490_v57 }
 0x1e1   : > { %v913_v59 = vpop.f32.mrf.mxu1 }
 0x1e2   : > { %v1193_v63 = vadd.f32 %v1192_v55, %v1161_v40  ;;  %v1264_v0 = vadd.f32 %v1263_v53, %v1233_v56  ;;  %968 = vst [vmem:[%s1910_s16 + $0xc0] sm:$0xff] %v913_v59  ;;  %v1163_v1 = vmul.f32 %v1488_v50, %v913_v59  ;;  %v1238_v22 = vmul.f32 %v1611_v49, %v1165_v8 }
 0x1e3   : > { %v1612_v2 = vpop.f32.mrf.mxu1 }
 0x1e4   : > { %v1265_v6 = vadd.f32 %v1264_v0, %v1234_v62  ;;  %v1194_v7 = vadd.f32 %v1193_v63, %v1162_v54  ;;  %971 = vst [vmem:[%s1910_s16 + $0xd8] sm:$0xff] %v1612_v2  ;;  %v1236_v12 = vmul.f32 %v1163_v1, %v913_v59  ;;  %v1166_v18 = vmul.f32 %v1612_v2, %v1491_v24 }
 0x1e5   : > { %v916_v9 = vpop.f32.mrf.mxu1 }
 0x1e6   : > { %v1195_v11 = vadd.f32 %v1194_v7, %v1163_v1  ;;  %v1266_v13 = vadd.f32 %v1265_v6, %v1235_v5  ;;  %969 = vst [vmem:[%s1910_s16 + $0xc8] sm:$0xff] %v916_v9  ;;  %v1164_v14 = vmul.f32 %v1489_v3, %v916_v9  ;;  %v1239_v29 = vmul.f32 %v1612_v2, %v1166_v18 }
 0x1e7   : > { %v2158_v15 = vpop.f32.mrf.mxu1 }
 0x1e8   : > { %v1267_v17 = vadd.f32 %v1266_v13, %v1236_v12  ;;  %v1196_v19 = vadd.f32 %v1195_v11, %v1164_v14  ;;  %v1237_v20 = vmul.f32 %v1164_v14, %v916_v9  ;;  %974 = vst [vmem:[%s1910_s16 + $0xf0] sm:$0xff] %v2158_v15  ;;  %v1169_v32 = vmul.f32 %v2158_v15, %v1494_v44 }
 0x1e9   : > { %v929_v21 = vpop.f32.mrf.mxu1 }
 0x1ea   : > { %v1197_v23 = vadd.f32 %v1196_v19, %v1165_v8  ;;  %v1268_v25 = vadd.f32 %v1267_v17, %v1237_v20  ;;  %972 = vst [vmem:[%s1910_s16 + $0xe0] sm:$0xff] %v929_v21  ;;  %v1167_v26 = vmul.f32 %v1492_v16, %v929_v21 }
 0x1eb   : > { %v1616_v27 = vpop.f32.mrf.mxu1 }
 0x1ec   : > { %v1269_v30 = vadd.f32 %v1268_v25, %v1238_v22  ;;  %v1198_v31 = vadd.f32 %v1197_v23, %v1166_v18  ;;  %975 = vst [vmem:[%s1910_s16 + $0xf8] sm:$0xff] %v1616_v27  ;;  %v1240_v36 = vmul.f32 %v1167_v26, %v929_v21 }
 0x1ed   : > { %v932_v34 = vpop.f32.mrf.mxu1 }
 0x1ee   : > { %v1199_v35 = vadd.f32 %v1198_v31, %v1167_v26  ;;  %v1270_v37 = vadd.f32 %v1269_v30, %v1239_v29  ;;  %973 = vst [vmem:[%s1910_s16 + $0xe8] sm:$0xff] %v932_v34  ;;  %v1168_v38 = vmul.f32 %v1493_v28, %v932_v34 }
 0x1ef   : > { %1708 = shalt.err (!%p1705_p7)
}
 0x1f0   : > { %s1709_s9 = scalar_lea.hbm %s2173_s26, 4096  ;;  %s1713_s14 = scalar_lea.hbm %s2246_s4, 8192 }
 0x1f1   : > { %p1710_p8 = scmp.ne.s32.totalorder %s2173_s26, %s1709_s9  ;;  %p1714_p11 = scmp.lt.s32.totalorder %s2173_s26, %s2246_s4 }
 0x1f2   : > { %p1715_p12 = scmp.lt.s32.totalorder %s1713_s14, %s1709_s9 }
 0x1f3   : > { %p1711_p9 = pnand %p1710_p8, %p1891_p5 }
 0x1f4   : > { %p1716_p13 = por %p1715_p12, %p1714_p11 }
 0x1f5   : > { %p1712_p10 = pneg %p1711_p9 }
 0x1f7   : > { %p1717_p0 = pnand %p1716_p13, %p1712_p10 }
 0x1f9   : > { %1720 = shalt.err (!%p1717_p0)
}
 0x1fa   : > { %s1812_s19 = smov 128   ;;  %s1813_s20 = smov 8   ;;  %v1271_v58 = vadd.f32 %v1270_v37, %v1240_v36  ;;  %v1170_v39 = vmul.f32 %v1616_v27, %v1495_v33  ;;  %v1200_v40 = vadd.f32 %v1199_v35, %v1168_v38  ;;  %v1241_v41 = vmul.f32 %v1168_v38, %v932_v34  ;;  %v1171_v60 = vld [vmem:[#allocation4] sm:$0x1]  ;;  %v1211_v63 = vld [vmem:[#allocation6] sm:$0x1] }
 0x1fb   : > { %1618 = dma.vmem_to_hbm [thread:$0]  (%p1891_p5), %s2175_s18, 4096, %s2173_s26, %s2183_s28, %s1812_s19, %s1812_s19, %s1813_s20   ;;  %v1242_v42 = vmul.f32 %v2158_v15, %v1169_v32 }
 0x1fc   : > { %v1201_v43 = vadd.f32 %v1200_v40, %v1169_v32  ;;  %v1272_v45 = vadd.f32 %v1271_v58, %v1241_v41  ;;  %v1243_v46 = vmul.f32 %v1616_v27, %v1170_v39  ;;  %s1814_s7 = smov [#allocation4]   ;;  %s1815_s26 = smov [#allocation6]  }
 0x1fd   : > { %s1311_s18 = sshll.u32 %s1814_s7, 4  ;;  %s1322_s28 = sshll.u32 %s1815_s26, 4  ;;  %s1312_s18 = int_to_ptr.vmem [resolvable:$true] %s1311_s18  ;;  %s1323_s28 = int_to_ptr.vmem [resolvable:$true] %s1322_s28 }
 0x1fe   : > { %v1202_v47 = vadd.f32 %v1201_v43, %v1170_v39  ;;  %v1273_v48 = vadd.f32 %v1272_v45, %v1242_v42  ;;  %s1721_s29 = scalar_lea.vmem %s1312_s18, 16  ;;  %s1727_s10 = scalar_lea.vmem %s1312_s18, 32 }
 0x1ff   : > { %p1722_p5 = scmp.ne.s32.totalorder %s1312_s18, %s1721_s29  ;;  %p1728_p4 = scmp.lt.s32.totalorder %s1312_s18, %s1312_s18 }
 0x200   : > { %v1203_v49 = vrot.slane %v1202_v47, 4  ;;  %v1274_v50 = vadd.f32 %v1273_v48, %v1243_v46  ;;  %p1729_p7 = scmp.lt.s32.totalorder %s1727_s10, %s1721_s29 }
 0x201   : > { %p1723_p1 = pnand %p1722_p5, %p128_p2 }
 0x202   : > { %v1275_v51 = vrot.slane %v1274_v50, 4  ;;  %v1204_v52 = vadd.f32 %v1203_v49, %v1202_v47  ;;  %p1730_p8 = por %p1729_p7, %p1728_p4 }
 0x203   : > { %p1724_p3 = pneg %p1723_p1 }
 0x204   : > { %v1205_v53 = vrot.slane %v1204_v52, 2  ;;  %v1276_v54 = vadd.f32 %v1275_v51, %v1274_v50 }
 0x205   : > { %p1731_p9 = pnand %p1730_p8, %p1724_p3 }
 0x206   : > { %v1206_v55 = vadd.f32 %v1205_v53, %v1204_v52  ;;  %v1277_v56 = vrot.slane %v1276_v54, 2 }
 0x208   : > { %v1207_v57 = vrot.slane %v1206_v55, 1  ;;  %v1278_v59 = vadd.f32 %v1277_v56, %v1276_v54 }
 0x20a   : > { %v1208_v61 = vadd.f32 %v1207_v57, %v1206_v55  ;;  %v1279_v62 = vrot.slane %v1278_v59, 1 }
 0x20c   : > { %v1209_v0 = vadd.f32 %v1208_v61, %v1171_v60  ;;  %v1280_v1 = vadd.f32 %v1279_v62, %v1278_v59 }
 0x20e   : > { %1210 = vst [vmem:[#allocation4] sm:$0x1] %v1209_v0  ;;  %v1281_v2 = vadd.f32 %v1280_v1, %v1211_v63 }
 0x20f   : > { %1734 = shalt.err (!%p1731_p9)
}
 0x210   : > { %1620 = dma.vmem_to_hbm [thread:$0]  (%p128_p2), %s1312_s18, 16, %s2247_s5, [#allocation5]   ;;  %1282 = vst [vmem:[#allocation6] sm:$0x1] %v1281_v2 }
 0x211   : > { %s1745_s9 = scalar_lea.vmem %s1323_s28, 16  ;;  %s1751_s16 = scalar_lea.vmem %s1323_s28, 32 }
 0x212   : > { %p1746_p10 = scmp.ne.s32.totalorder %s1323_s28, %s1745_s9  ;;  %p1752_p13 = scmp.lt.s32.totalorder %s1323_s28, %s1323_s28 }
 0x213   : > { %p1753_p0 = scmp.lt.s32.totalorder %s1751_s16, %s1745_s9 }
 0x214   : > { %p1747_p11 = pnand %p1746_p10, %p128_p2 }
 0x215   : > { %p1754_p5 = por %p1753_p0, %p1752_p13 }
 0x216   : > { %p1748_p12 = pneg %p1747_p11 }
 0x218   : > { %p1755_p1 = pnand %p1754_p5, %p1748_p12 }
 0x21a   : > { %1758 = shalt.err (!%p1755_p1)
}
 0x21b   : > { %1622 = dma.vmem_to_hbm [thread:$0]  (%p128_p2), %s1323_s28, 16, %s2248_s6, [#allocation5]  }
 0x21c   : > { %1786 = dma.done.wait (%p128_p2), [#allocation5], 32  }
 0x21d   : > { %1788 = vsyncadd (%p128_p2), [#allocation5], 4294967264 }
 0x21e PF: > { %p1636_p3 = scmp.ge.s32.totalorder %s1807_s24, 2  ;;  %s1342_s15 = sand.u32 1, %s1795_s21  }
 0x21f   : > { %s1343_s17 = scalar_lea.sflag [#allocation3], %s1342_s15 }
 0x220   : > { %p1629_p4 = pnand %p1636_p3, %p1895_p6 }
 0x222   : > { %p1630_p7 = pneg %p1629_p4 }
 0x224   : > { %1790 = dma.done.wait (%p1630_p7), %s1343_s17, 4096  }
 0x225   : > { %1792 = vsyncadd (%p1630_p7), %s1343_s17, 4294963200  ;;  %p18_p8 = scmp.ge.s32.totalorder %s1876_s27, 4   ;;  %s2251_s21 = smov %s1799_s22 }
 0x226   : > { %s2252_s22 = smov %s1803_s23  ;;  %s2253_s23 = smov %s1887_s30 }
 0x227   : > { %s2254_s24 = smov %s1876_s27  ;;  %20 = sbr.rel (!%p18_p8) target bundleno = 4 (0x4), region = 91 }
 0x22c   :  { %1348 = vsyncpa [#allocation3], 1 }
 0x22d   :  { %1350 = vsyncpa [#allocation3 + $0x1], 1 }
 0x22e   :  { %1351 = vsyncpa [#allocation5], 1 }

</bundles_post_ra>
